<compile_context>
chip_gen: v7x
topology: tpu7x:2x2x1
jax: 0.10.0
libtpu: 0.0.40
codegen_flags: <defaults>
</compile_context>

<pallas_src>
import math
import functools

import jax
import jax.numpy as jnp
from jax.experimental import pallas as pl
from jax.experimental.pallas import tpu as pltpu


def _round_up(n, m):
    return ((n + m - 1) // m) * m


def ffm_kernel(w_ref, x_ref, o_ref, *, L, D, h):
    """One batch tile.

    w_ref: VMEM (D, h*D)     resident kron matrix for the first h harmonics
    x_ref: VMEM (TB, D)      batch tile of inputs
    o_ref: VMEM (TB, 2*L*D)  [sin(1..L), cos(1..L)] feature tile
    """
    x = x_ref[...]

    # Harmonics 1..h, lane-dense: arg0[:, (m-1)*D + d] = m * (pi/2) * x[:, d].
    # MXU does the replication+scale; HIGHEST keeps f32 accuracy (the
    # contraction has a single nonzero per output column).
    arg0 = jnp.dot(x, w_ref[...], preferred_element_type=jnp.float32,
                   precision=jax.lax.Precision.HIGHEST)
    s = jnp.sin(arg0)                                   # (TB, h*D)
    c = jnp.cos(arg0)

    sin_parts = [s]
    cos_parts = [c]

    if L > h:
        # Remaining harmonics via the angle-addition recurrence, one group of
        # h harmonics at a time:
        #   sin((g*h + m)t) = sin(((g-1)*h + m)t)*cos(h t) + cos(...)*sin(h t)
        # The shift terms sin(h*t)/cos(h*t) are the last D columns of group 0,
        # lane-replicated once (XLU placement, off the VALU critical path).
        s_h = s[:, (h - 1) * D: h * D]                  # (TB, D) = sin(h*t)
        c_h = c[:, (h - 1) * D: h * D]                  # (TB, D) = cos(h*t)
        s_shift = jnp.concatenate([s_h] * h, axis=1)    # (TB, h*D)
        c_shift = jnp.concatenate([c_h] * h, axis=1)

        s_prev, c_prev = s, c
        produced = h
        while produced < L:                             # unrolled at trace time
            m = min(h, L - produced)                    # harmonics this group
            width = m * D
            sp, cp = s_prev[:, :width], c_prev[:, :width]
            ss, cs = s_shift[:, :width], c_shift[:, :width]
            s_new = sp * cs + cp * ss
            c_new = cp * cs - sp * ss
            sin_parts.append(s_new)
            cos_parts.append(c_new)
            s_prev, c_prev = s_new, c_new
            produced += m

    # Single lane-dense store of the whole tile: sin block then cos block,
    # exactly the torch.hstack(kron) column layout.
    out = jnp.concatenate(sin_parts + cos_parts, axis=-1)
    o_ref[...] = out.astype(o_ref.dtype)


def ffm_layer(x, coefs, *, block_rows=1024, out_dtype=None):
    """x: (B, D), coefs: (L,) -> (B, 2*L*D) = [sin(kron(coefs,x)), cos(...)]."""
    B, D = x.shape
    L = coefs.shape[0]
    LD = L * D
    out_dtype = x.dtype if out_dtype is None else jnp.dtype(out_dtype)

    # Harmonics evaluated directly with sin/cos: enough to fill one 128-lane
    # vreg group (all of them if L*D <= 128).
    h = max(1, min(L, 128 // D if D <= 128 else 1))

    # Kron matrix for the first h harmonics: W[d, m*D + d] = coefs[m].
    eye = jnp.eye(D, dtype=jnp.float32)
    w = coefs[:h].astype(jnp.float32)[:, None, None] * eye[None, :, :]  # (h,D,D)
    w = w.transpose(1, 0, 2).reshape(D, h * D).astype(x.dtype)

    # Batch tile: as large as block_rows allows, but capped so the grid has
    # >= 2 steps whenever B allows it (keeps both v7x TensorCores busy).
    tb = min(block_rows, max(8, _round_up(pl.cdiv(B, 2), 8)))
    if tb >= B:
        tb = B
    grid = (pl.cdiv(B, tb),)

    kernel = functools.partial(ffm_kernel, L=L, D=D, h=h)

    flops = 2 * B * D * (h * D) + 6 * B * max(0, L - h) * D
    bytes_accessed = ((B * D + D * h * D) * x.dtype.itemsize
                      + B * 2 * LD * out_dtype.itemsize)

    return pl.pallas_call(
        kernel,
        out_shape=jax.ShapeDtypeStruct((B, 2 * LD), out_dtype),
        grid=grid,
        in_specs=[
            # Constant small matrix: same block every step -> stays resident.
            pl.BlockSpec((D, h * D), lambda i: (0, 0)),
            # Batch-tiled input, auto double-buffered by the Pallas pipeline.
            pl.BlockSpec((tb, D), lambda i: (i, 0)),
        ],
        out_specs=pl.BlockSpec((tb, 2 * LD), lambda i: (i, 0)),
        compiler_params=pltpu.CompilerParams(
            dimension_semantics=("parallel",),
        ),
        cost_estimate=pl.CostEstimate(
            flops=flops,
            transcendentals=2 * B * h * D,
            bytes_accessed=bytes_accessed,
        ),
    )(w, x)


if __name__ == "__main__":
    L = 10             # FFMLayer default
    rep_dim = 16
    B = 40             # small, but > block_rows below: exercises the
                       # multi-step grid and the partial last block

    key = jax.random.PRNGKey(0)
    x = jax.random.normal(key, (B, rep_dim), dtype=jnp.float32)

    # Deterministic parameter init, exactly matching the module's __init__:
    # torch.arange(1, L + 1e-12) * pi * 0.5  ->  [1..L] * pi/2
    coefs = jnp.arange(1, L + 1, dtype=jnp.float32) * math.pi * 0.5

    # Small block_rows only to force a 3-step grid (40 = 16 + 16 + 8) in this
    # demo; production callers keep the default 1024.
    out = jax.block_until_ready(ffm_layer(x, coefs, block_rows=16))

    # Pure-JAX reference of the PyTorch forward (kron + hstack).
    arg_ref = jnp.kron(coefs, x)                       # (B, L*rep_dim)
    ref = jnp.hstack((jnp.sin(arg_ref), jnp.cos(arg_ref)))

    assert out.shape == (B, 2 * L * rep_dim), out.shape
    # 5e-5 abs tolerance: the MXU multi-pass f32 product and the harmonic
    # recurrence differ from the reference's direct f32 multiply + sin/cos by
    # a few float32 ulps of the (|arg| ~ 50) argument.
    max_diff = float(jnp.max(jnp.abs(out - ref)))
    assert jnp.allclose(out, ref, atol=5e-5, rtol=1e-5), max_diff
    print("KERNEL_OK")
</pallas_src>

<mosaic_0001>
module attributes {stable_mosaic.version = 11 : i64} {
  func.func @ffm_kernel(%arg0: i32, %arg1: memref<16x128xf32, #tpu.memory_space<vmem>>, %arg2: memref<16x16xf32, #tpu.memory_space<vmem>>, %arg3: memref<16x320xf32, #tpu.memory_space<vmem>>) attributes {dimension_semantics = [#tpu.dimension_semantics<parallel>], iteration_bounds = array<i64: 3>, scalar_prefetch = 0 : i64, scratch_operands = 0 : i64, tpu.core_type = #tpu.core_type<tc>, window_params = [{pipeline_mode = #tpu.pipeline_mode<synchronous>, transform_indices = @transform_0, window_bounds = array<i64: 16, 128>}, {transform_indices = @transform_1, window_bounds = array<i64: 16, 16>}, {transform_indices = @transform_2, window_bounds = array<i64: 16, 320>}]} {
    %c0 = arith.constant 0 : index
    %c0_0 = arith.constant 0 : index
    %0 = vector.load %arg2[%c0, %c0_0] : memref<16x16xf32, #tpu.memory_space<vmem>>, vector<16x16xf32>
    %c0_1 = arith.constant 0 : index
    %c0_2 = arith.constant 0 : index
    %1 = vector.load %arg1[%c0_1, %c0_2] : memref<16x128xf32, #tpu.memory_space<vmem>>, vector<16x128xf32>
    %cst = arith.constant dense<0.000000e+00> : vector<16x128xf32>
    %2 = tpu.matmul %0, %1, %cst {dimension_numbers = #tpu.dot_dimension_numbers<[1], [0], [0], [1], [0, 0, 1, 1], [], []>, precision = #tpu.contract_precision<fp32>} : vector<16x16xf32>, vector<16x128xf32>, vector<16x128xf32> -> vector<16x128xf32>
    %3 = math.sin %2 : vector<16x128xf32>
    %4 = math.cos %2 : vector<16x128xf32>
    %5 = vector.extract_strided_slice %3 {offsets = [0, 112], sizes = [16, 16], strides = [1, 1]} : vector<16x128xf32> to vector<16x16xf32>
    %6 = vector.extract_strided_slice %4 {offsets = [0, 112], sizes = [16, 16], strides = [1, 1]} : vector<16x128xf32> to vector<16x16xf32>
    %7 = tpu.concatenate %5, %5, %5, %5, %5, %5, %5, %5 in 1 : vector<16x16xf32>, vector<16x16xf32>, vector<16x16xf32>, vector<16x16xf32>, vector<16x16xf32>, vector<16x16xf32>, vector<16x16xf32>, vector<16x16xf32> -> vector<16x128xf32>
    %8 = tpu.concatenate %6, %6, %6, %6, %6, %6, %6, %6 in 1 : vector<16x16xf32>, vector<16x16xf32>, vector<16x16xf32>, vector<16x16xf32>, vector<16x16xf32>, vector<16x16xf32>, vector<16x16xf32>, vector<16x16xf32> -> vector<16x128xf32>
    %9 = vector.extract_strided_slice %3 {offsets = [0, 0], sizes = [16, 32], strides = [1, 1]} : vector<16x128xf32> to vector<16x32xf32>
    %10 = vector.extract_strided_slice %4 {offsets = [0, 0], sizes = [16, 32], strides = [1, 1]} : vector<16x128xf32> to vector<16x32xf32>
    %11 = vector.extract_strided_slice %7 {offsets = [0, 0], sizes = [16, 32], strides = [1, 1]} : vector<16x128xf32> to vector<16x32xf32>
    %12 = vector.extract_strided_slice %8 {offsets = [0, 0], sizes = [16, 32], strides = [1, 1]} : vector<16x128xf32> to vector<16x32xf32>
    %13 = arith.mulf %9, %12 : vector<16x32xf32>
    %14 = arith.mulf %10, %11 : vector<16x32xf32>
    %15 = arith.addf %13, %14 : vector<16x32xf32>
    %16 = arith.mulf %10, %12 : vector<16x32xf32>
    %17 = arith.mulf %9, %11 : vector<16x32xf32>
    %18 = arith.subf %16, %17 : vector<16x32xf32>
    %19 = tpu.concatenate %3, %15, %4, %18 in 1 : vector<16x128xf32>, vector<16x32xf32>, vector<16x128xf32>, vector<16x32xf32> -> vector<16x320xf32>
    %c0_3 = arith.constant 0 : index
    %c0_4 = arith.constant 0 : index
    %20 = vector.load %arg3[%c0_3, %c0_4] : memref<16x320xf32, #tpu.memory_space<vmem>>, vector<16x320xf32>
    tpu.vector_store %arg3[%c0_3, %c0_4], %19 {strides = array<i32>} : memref<16x320xf32, #tpu.memory_space<vmem>>, vector<16x320xf32>,
    return
  }
  func.func @transform_0(%arg0: i32) -> (i32, i32) {
    %c0_i32 = arith.constant 0 : i32
    %c0_i32_0 = arith.constant 0 : i32
    %c0_i32_1 = arith.constant 0 : i32
    return %c0_i32, %c0_i32_0 : i32, i32
  }
  func.func @transform_1(%arg0: i32) -> (i32, i32) {
    %c0_i32 = arith.constant 0 : i32
    %c0_i32_0 = arith.constant 0 : i32
    return %arg0, %c0_i32 : i32, i32
  }
  func.func @transform_2(%arg0: i32) -> (i32, i32) {
    %c0_i32 = arith.constant 0 : i32
    %c0_i32_0 = arith.constant 0 : i32
    return %arg0, %c0_i32 : i32, i32
  }
}

</mosaic_0001>

<bundles_post_ra>
// kernel: tpu_custom_call.1
= control target key start
LH: loop header
LB: loop body
LE: loop exit
PB: predicated region body
PF: predicated region fallthrough
CT: control target
= control target key end

     0   :  { %7 = vsyncpa [#allocation3], 0  ;;  %s1934_s0 = inlined_call_operand.vmem [shape: f32[16,128], index: 0, kind: input, shape index: {}]   ;;  %s1935_s1 = inlined_call_operand.vmem [shape: f32[40,16], index: 1, kind: input, shape index: {}]   ;;  %s1936_s2 = inlined_call_operand.hbm [shape: f32[40,320], index: 2, kind: output, shape index: {}]  }
   0x1   :  { %9 = vsyncpa [#allocation3 + $0x1], 0  ;;  %s1630_s9 = smov 0   ;;  %s1632_s10 = smov 0  }
   0x2   :  { %s1634_s11 = smov 0   ;;  %s1636_s12 = smov 0  }
   0x3 LB: > { %s1651_s13 = sadd.s32 4294967295, %s1597_s12   ;;  %s1333_s14 = sadd.s32 4294967294, %s1597_s12   ;;  %s1597_s12 = sphi %s1636_s12, %s1942_s12   ;;  %s1593_s11 = sphi %s1634_s11, %s1941_s11   ;;  %s1589_s10 = sphi %s1632_s10, %s1940_s10   ;;  %s1585_s9 = sphi %s1630_s9, %s1939_s9  }
   0x4   : > { %s1655_s15 = sadd.s32 1, %s1597_s12   ;;  %s69_s16 = sadd.s32 1, %s1593_s11 }
   0x5   : > { %s66_s17 = ssub.s32 %s1597_s12, %s1655_s15  ;;  %p79_p0 = scmp.ne.s32.totalorder %s1593_s11, %s1589_s10 }
   0x6   : > { %p67_p1 = scmp.eq.s32.totalorder %s66_s17, 0  ;;  %p80_p2 = scmp.eq.s32.totalorder %s1651_s13, 2 }
   0x7   : > { %p85_p3 = scmp.ne.s32.totalorder %s1589_s10, %s1585_s9  ;;  %p86_p4 = scmp.eq.s32.totalorder %s1333_s14, 2 }
   0x8   : > { %s1666_s18 = scalar_select %p67_p1, %s1593_s11, %s69_s16  }
   0x9   : > { %p1668_p5 = por %p80_p2, %p79_p0  ;;  %p1672_p6 = por %p86_p4, %p85_p3 }
   0xa   : > { %p1336_p7 = scmp.ge.s32.totalorder %s1597_s12, 1  ;;  %p124_p8 = scmp.lt.s32.totalorder %s1597_s12, 4 }
   0xc   : > { %p125_p9 = pnand %p1336_p7, %p124_p8 }
   0xd   : > { %v172_v0 = vld [vmem:[%s1934_s0] sm:$0xff] (!%p125_p9)  ;;  %v173_v1 = vld [vmem:[%s1934_s0 + $0x8] sm:$0xff] (!%p125_p9)  ;;  %s1685_s25 = sshll.u32 (!%p125_p9), %s1651_s13, 1  ;;  %vm174_vm0 = vcmask (!%p125_p9), 130048   ;;  %v1599_v56 = vmov (!%p125_p9), 683565275  }
   0xe   : > { %128 = sbr.rel (%p125_p9) target bundleno = 672 (0x2a0), region = 28  ;;  %v182_v2 = vand.u32 (!%p125_p9), 4294901760, %v172_v0  ;;  %v185_v3 = vand.u32 (!%p125_p9), 4294901760, %v173_v1  ;;  %p155_p10 = scmp.lt.s32.totalorder (!%p125_p9), %s1685_s25, 4  ;;  %v1600_v60 = vmov (!%p125_p9), 2475754826  }
   0xf   : > { %v1601_v62 = vmov (!%p125_p9), 2131351028   ;;  %s147_s3 = sand.u32 (!%p125_p9), 1, %s1589_s10   ;;  %s1605_s5 = smov (!%p125_p9), 32  }
  0x10   : > { %v1430_v4 = vpack.c.bf16 (!%p125_p9), %v185_v3, %v182_v2  ;;  %v270_v5 = vsub.f32 (!%p125_p9), %v172_v0, %v182_v2  ;;  %v277_v6 = vsub.f32 (!%p125_p9), %v173_v1, %v185_v3  ;;  %v1602_v0 = vmov (!%p125_p9), 2102212464   ;;  %s1464_s4 = smul.u32 (!%p125_p9), 48, %s147_s3  ;;  %s1606_s6 = smov (!%p125_p9), 16  }
  0x11   : > { %v1603_v2 = vmov (!%p125_p9), 920167782   ;;  %s1607_s8 = smov (!%p125_p9), 48   ;;  %s1608_s14 = smov (!%p125_p9), 64  }
  0x12   : > { %1443 = vmatprep.subr.bf16.mxu0 (!%p125_p9), %v1430_v4  ;;  %1431 = vmatprep.subr.bf16.mxu1 (!%p125_p9), %v1430_v4  ;;  %v271_v7 = vand.u32 (!%p125_p9), 4294901760, %v270_v5  ;;  %v278_v8 = vand.u32 (!%p125_p9), 4294901760, %v277_v6  ;;  %v1438_v29 = vpack.c.bf16 (!%p125_p9), %v277_v6, %v270_v5  ;;  %s1764_s7 = scalar_lea.vmem (!%p125_p9), [#allocation2], %s1464_s4  ;;  %s1609_s16 = smov (!%p125_p9), 80  }
  0x13   : > { %1445 = vmatpush3.bf16.msra.mxu0 (!%p125_p9), %v1430_v4  ;;  %1433 = vmatpush3.bf16.msra.mxu1 (!%p125_p9), %v1430_v4  ;;  %s1610_s17 = smov (!%p125_p9), 96   ;;  %s1611_s21 = smov (!%p125_p9), 112  }
  0x14   : > { %v272_v11 = vsub.f32 (!%p125_p9), %v270_v5, %v271_v7  ;;  %v279_v12 = vsub.f32 (!%p125_p9), %v277_v6, %v278_v8  ;;  %v1446_v13 = vpack.c.bf16 (!%p125_p9), %v278_v8, %v271_v7  ;;  %s1873_s22 = scalar_lea.sflag (!%p125_p9), [#allocation3], %s147_s3 }
  0x15   : > { %s156_s26 = scalar_select %p155_p10, %s1685_s25, 4 }
  0x16   : > { %v273_v18 = vand.u32 4294901760, %v272_v11  ;;  %v280_v19 = vand.u32 4294901760, %v279_v12  ;;  %1447 = vmatprep.subr.bf16.mxu0 %v1446_v13  ;;  %s1258_s23 = ssub.s32 (%p1668_p5), 5, %s1685_s25 }
  0x17   : > { %s1338_s27 = sshll.u32 %s156_s26, 3  ;;  %p1259_p11 = scmp.lt.s32.totalorder (%p1668_p5), %s1258_s23, 2 }
  0x18   : > { %s158_s30 = scalar_lea.vmem %s1935_s1, %s1338_s27  ;;  %v1434_v22 = vpack.c.bf16 %v280_v19, %v273_v18 }
  0x19   : > { %v170_v9 = vld [vmem:[%s158_s30] sm:$0xff]  ;;  %v171_v10 = vld [vmem:[%s158_s30 + $0x8] sm:$0xff] }
  0x1a   : > { %v176_v14 = vsel %vm174_vm0, %v170_v9, 0  ;;  %v179_v15 = vsel %vm174_vm0, %v171_v10, 0  ;;  %1435 = vmatprep.subr.bf16.mxu1 %v1434_v22  ;;  %v1604_v9 = vmov 1326507024  }
  0x1b   : > { %v248_v16 = vand.u32 4294901760, %v176_v14  ;;  %v258_v17 = vand.u32 4294901760, %v179_v15 }
  0x1d   : > { %v249_v20 = vsub.f32 %v176_v14, %v248_v16  ;;  %v259_v21 = vsub.f32 %v179_v15, %v258_v17 }
  0x1f   : > { %v250_v23 = vand.u32 4294901760, %v249_v20  ;;  %v260_v24 = vand.u32 4294901760, %v259_v21 }
  0x21   : > { %1413 = vmatprep.mubr.f32.mxu0 %v250_v23  ;;  %v251_v25 = vsub.f32 %v249_v20, %v250_v23  ;;  %v261_v26 = vsub.f32 %v259_v21, %v260_v24 }
  0x22   : > { %1414 = vmatmul.mubr.f32.vlgmr.msra.gmra.mrb[0].mxu0 %v260_v24 }
  0x23   : > { %v252_v27 = vand.u32 4294901760, %v251_v25  ;;  %v262_v28 = vand.u32 4294901760, %v261_v26  ;;  %1449 = vmatpush3.bf16.msra.mxu0 %v1446_v13  ;;  %1420 = vmatprep.mubr.f32.mxu0 %v248_v16 }
  0x24   : > { %1451 = vmatprep.subr.bf16.mxu0 %v1430_v4 }
  0x25   : > { %1392 = vmatprep.mubr.f32.mxu1 %v252_v27 }
  0x26   : > { %1393 = vmatmul.mubr.f32.vlgmr.msra.gmra.mrb[0].mxu1 %v262_v28 }
  0x27   : > { %1437 = vmatpush3.bf16.msra.mxu1 %v1434_v22  ;;  %1399 = vmatprep.mubr.f32.mxu1 %v248_v16 }
  0x28   : > { %1439 = vmatprep.subr.bf16.mxu1 %v1438_v29 }
  0x2a   : > { %1421 = vmatmul.mubr.f32.vlgmr.msra.gmra.mrb[0].mxu0 %v258_v17 }
  0x2b   : > { %1453 = vmatpush3.bf16.msra.mxu0 %v1430_v4  ;;  %1427 = vmatprep.mubr.f32.mxu0 %v248_v16 }
  0x2e   : > { %1400 = vmatmul.mubr.f32.vlgmr.msra.gmra.mrb[0].mxu1 %v258_v17 }
  0x2f   : > { %1441 = vmatpush3.bf16.msra.mxu1 %v1438_v29  ;;  %1406 = vmatprep.mubr.f32.mxu1 %v249_v20 }
  0x32   : > { %1428 = vmatmul.mubr.f32.vlgmr.msra.gmra.mrb[0].mxu0 %v258_v17 }
  0x36   : > { %1407 = vmatmul.mubr.f32.vlgmr.msra.gmra.mrb[0].mxu1 %v259_v21 }
 0x105   : > { %v1429_v30 = vpop.f32.mrb[0].mxu0 }
 0x106   : > { %v673_v31 = vpop.f32.mrb[1].mxu0 }
 0x109   : > { %v1408_v32 = vpop.f32.mrb[0].mxu1 }
 0x10a   : > { %v1694_v33 = vadd.f32 %v1429_v30, %v1408_v32  ;;  %v427_v34 = vpop.f32.mrb[1].mxu1 }
 0x10b   : > { %v1696_v35 = vadd.f32 %v673_v31, %v427_v34 }
 0x10c   : > { %v787_v36 = vand.u32 2147483647, %v1694_v33  ;;  %v790_v37 = vand.u32 2139095040, %v1694_v33  ;;  %vm789_vm15 = vcmp.lt.s32.totalorder %v1694_v33, 0 }
 0x10d   : > { %v686_v38 = vand.u32 2139095040, %v1696_v35  ;;  %v683_v41 = vand.u32 2147483647, %v1696_v35 }
 0x10e   : > { %v791_v39 = vshrl.u32 %v790_v37, 23  ;;  %v794_v40 = vand.u32 8388607, %v787_v36 }
 0x10f   : > { %v687_v42 = vshrl.u32 %v686_v38, 23  ;;  %v1706_v47 = vand.u32 8388607, %v683_v41 }
 0x110   : > { %v1343_v43 = vadd.s32 4294967169, %v791_v39  ;;  %v795_v46 = vor.u32 8388608, %v794_v40 }
 0x111   : > { %v1339_v44 = vadd.s32 4294967169, %v687_v42  ;;  %v691_v54 = vor.u32 8388608, %v1706_v47 }
 0x112   : > { %v797_v45 = vadd.s32 1, %v1343_v43  ;;  %v1708_v53 = vshll.u32 %v795_v46, 8 }
 0x113   : > { %v693_v48 = vadd.s32 1, %v1339_v44 }
 0x114   : > { %vm798_vm1 = vcmp.gt.s32.totalorder %v797_v45, 0 }
 0x115   : > { %v799_v49 = vsel %vm798_vm1, %v797_v45, 0  ;;  %vm694_vm2 = vcmp.gt.s32.totalorder %v693_v48, 0  ;;  %vm788_vm1 = vcmp.le.f32.partialorder %v787_v36, 0.7853982 }
 0x116   : > { %v800_v50 = vshrl.u32 %v799_v49, 5  ;;  %v801_v51 = vand.u32 31, %v799_v49  ;;  %v695_v52 = vsel %vm694_vm2, %v693_v48, 0  ;;  %v731_v48 = vshll.u32 %v691_v54, 8 }
 0x117   : > { %v1711_v58 = vshrl.u32 %v695_v52, 5  ;;  %v697_v59 = vand.u32 31, %v695_v52  ;;  %vm685_vm2 = vcmp.lt.s32.totalorder %v1696_v35, 0 }
 0x118   : > { %v802_v55 = vsub.s32 32, %v801_v51  ;;  %v804_v57 = vshll.u32 %v1599_v56, %v801_v51  ;;  %v807_v61 = vshll.u32 %v1600_v60, %v801_v51  ;;  %v810_v63 = vshll.u32 %v1601_v62, %v801_v51 }
 0x119   : > { %v813_v1 = vshll.u32 %v1602_v0, %v801_v51  ;;  %v816_v3 = vshll.u32 %v1603_v2, %v801_v51  ;;  %vm819_vm3 = vcmp.lt.s32.totalorder %v800_v50, 1  ;;  %vm820_vm4 = vcmp.lt.s32.totalorder %v800_v50, 2 }
 0x11a   : > { %v805_v4 = vshrl.u32 %v1600_v60, %v802_v55  ;;  %v808_v5 = vshrl.u32 %v1601_v62, %v802_v55  ;;  %v811_v6 = vshrl.u32 %v1602_v0, %v802_v55  ;;  %v803_v7 = vshrl.u32 %v1599_v56, %v802_v55 }
 0x11b   : > { %v814_v8 = vshrl.u32 %v1603_v2, %v802_v55  ;;  %v817_v10 = vshrl.u32 %v1604_v9, %v802_v55  ;;  %v698_v14 = vsub.s32 32, %v697_v59  ;;  %vm821_vm5 = vcmp.lt.s32.totalorder %v800_v50, 3 }
 0x11c   : > { %v806_v11 = vor.u32 %v805_v4, %v804_v57  ;;  %v809_v12 = vor.u32 %v808_v5, %v807_v61  ;;  %v812_v13 = vor.u32 %v811_v6, %v810_v63  ;;  %vm822_vm6 = vcmp.lt.s32.totalorder %v800_v50, 4 }
 0x11d   : > { %v815_v15 = vor.u32 %v814_v8, %v813_v1  ;;  %v818_v16 = vor.u32 %v817_v10, %v816_v3  ;;  %v700_v24 = vshll.u32 %v1599_v56, %v697_v59  ;;  %v701_v27 = vshrl.u32 %v1600_v60, %v698_v14 }
 0x11e   : > { %v823_v17 = vsel %vm819_vm3, %v803_v7, %v806_v11  ;;  %v824_v18 = vsel %vm822_vm6, %v812_v13, 2102212464  ;;  %v827_v19 = vsel %vm819_vm3, %v806_v11, %v809_v12  ;;  %v831_v20 = vsel %vm819_vm3, %v809_v12, %v812_v13 }
 0x11f   : > { %v825_v21 = vsel %vm821_vm5, %v809_v12, %v824_v18  ;;  %v828_v22 = vsel %vm822_vm6, %v815_v15, 920167782  ;;  %v832_v23 = vsel %vm822_vm6, %v818_v16, 1326507024  ;;  %v703_v28 = vshll.u32 %v1600_v60, %v697_v59 }
 0x120   : > { %v829_v25 = vsel %vm821_vm5, %v812_v13, %v828_v22  ;;  %v833_v26 = vsel %vm821_vm5, %v815_v15, %v832_v23  ;;  %v826_v29 = vsel %vm820_vm4, %v823_v17, %v825_v21  ;;  %v704_v32 = vshrl.u32 %v1601_v62, %v698_v14 }
 0x121   : > { %v830_v30 = vsel %vm820_vm4, %v827_v19, %v829_v25  ;;  %v834_v31 = vsel %vm820_vm4, %v831_v20, %v833_v26  ;;  %v702_v40 = vor.u32 %v701_v27, %v700_v24  ;;  %v706_v43 = vshll.u32 %v1601_v62, %v697_v59 }
 0x122   : > { %v1720_v34 = vmul.u32.u64.low %v1708_v53, %v834_v31  ;;  %v1721_v37 = vmul.u32.u64.high %v1708_v53, %v834_v31, %v1720_v34  ;;  %v1724_v38 = vmul.u32.u64.low %v1708_v53, %v830_v30  ;;  %v1725_v39 = vmul.u32.u64.high %v1708_v53, %v830_v30, %v1724_v38 }
 0x123   : > { %v705_v42 = vor.u32 %v704_v32, %v703_v28  ;;  %v707_v44 = vshrl.u32 %v1602_v0, %v698_v14  ;;  %v709_v45 = vshll.u32 %v1602_v0, %v697_v59  ;;  %v710_v46 = vshrl.u32 %v1603_v2, %v698_v14 }
 0x124   : > { %v713_v47 = vshrl.u32 %v1604_v9, %v698_v14  ;;  %v842_v49 = vmul.u32 %v1708_v53, %v826_v29  ;;  %v699_v50 = vshrl.u32 %v1599_v56, %v698_v14  ;;  %v712_v52 = vshll.u32 %v1603_v2, %v697_v59 }
 0x125   : > { %v708_v51 = vor.u32 %v707_v44, %v706_v43  ;;  %vm844_vm7 = vc.u32 %v1721_v37, %v1724_v38  ;;  %v845_v55 = vadd.s32 1, %v1725_v39  ;;  %v711_v57 = vor.u32 %v710_v46, %v709_v45 }
 0x126   : > { %vm715_vm8 = vcmp.lt.s32.totalorder %v1711_v58, 1  ;;  %v714_v60 = vor.u32 %v713_v47, %v712_v52  ;;  %vm717_vm9 = vcmp.lt.s32.totalorder %v1711_v58, 3  ;;  %vm718_vm10 = vcmp.lt.s32.totalorder %v1711_v58, 4 }
 0x127   : > { %v723_v61 = vsel %vm715_vm8, %v702_v40, %v705_v42  ;;  %v846_v54 = vsel %vm844_vm7, %v845_v55, %v1725_v39  ;;  %v720_v62 = vsel %vm718_vm10, %v708_v51, 2102212464  ;;  %v724_v53 = vsel %vm718_vm10, %v711_v57, 920167782 }
 0x128   : > { %v727_v56 = vsel %vm715_vm8, %v705_v42, %v708_v51  ;;  %v847_v63 = vadd.s32 %v846_v54, %v842_v49  ;;  %vm716_vm11 = vcmp.lt.s32.totalorder %v1711_v58, 2  ;;  %v725_v59 = vsel %vm717_vm9, %v708_v51, %v724_v53 }
 0x129   : > { %v728_v0 = vsel %vm718_vm10, %v714_v60, 1326507024  ;;  %v719_v1 = vsel %vm715_vm8, %v699_v50, %v702_v40  ;;  %v721_v2 = vsel %vm717_vm9, %v705_v42, %v720_v62  ;;  %v726_v3 = vsel %vm716_vm11, %v723_v61, %v725_v59 }
 0x12a   : > { %v729_v4 = vsel %vm717_vm9, %v711_v57, %v728_v0  ;;  %v848_v5 = vadd.s32 536870912, %v847_v63  ;;  %v1735_v7 = vmul.u32.u64.low %v731_v48, %v726_v3  ;;  %v1736_v8 = vmul.u32.u64.high %v731_v48, %v726_v3, %v1735_v7 }
 0x12b   : > { %v730_v6 = vsel %vm716_vm11, %v727_v56, %v729_v4  ;;  %v722_v12 = vsel %vm716_vm11, %v719_v1, %v721_v2  ;;  %v843_v28 = vadd.s32 %v1724_v38, %v1721_v37  ;;  %vm684_vm3 = vcmp.le.f32.partialorder %v683_v41, 0.7853982 }
 0x12c   : > { %v1738_v9 = vmul.u32.u64.low %v731_v48, %v730_v6  ;;  %v1739_v10 = vmul.u32.u64.high %v731_v48, %v730_v6, %v1738_v9  ;;  %v849_v11 = vshrl.u32 %v848_v5, 30  ;;  %v741_v14 = vadd.s32 1, %v1736_v8 }
 0x12d   : > { %v738_v58 = vmul.u32 %v731_v48, %v722_v12  ;;  %vm879_vm9 = vweird.f32 %v1694_v33 }
 0x12e   : > { %v850_v13 = vshll.u32 %v849_v11, 30  ;;  %vm740_vm12 = vc.u32 %v1739_v10, %v1735_v7  ;;  %v739_v49 = vadd.s32 %v1735_v7, %v1739_v10  ;;  %v873_v38 = vsub.s32 4, %v849_v11 }
 0x12f   : > { %v742_v16 = vsel %vm740_vm12, %v741_v14, %v1736_v8 }
 0x130   : > { %v851_v15 = vsub.s32 %v847_v63, %v850_v13  ;;  %v743_v17 = vadd.s32 %v742_v16, %v738_v58  ;;  %v874_v53 = vsel %vm789_vm15, %v873_v38, %v849_v11 }
 0x131   : > { %v876_v59 = vsel %vm788_vm1, 0, %v874_v53 }
 0x132   : > { %v853_v18 = vsub.s32 0, %v851_v15  ;;  %v744_v19 = vadd.s32 536870912, %v743_v17  ;;  %v880_v4 = vadd.s32 3, %v876_v59  ;;  %v1087_v8 = vand.u32 3, %v876_v59 }
 0x134   : > { %v1344_v20 = vmin.u32 %v853_v18, %v851_v15  ;;  %v745_v21 = vshrl.u32 %v744_v19, 30  ;;  %v881_v7 = vand.u32 3, %v880_v4  ;;  %vm1089_vm5 = vcmp.eq.s32.totalorder %v1087_v8, 0 }
 0x135   : > { %vm1092_vm7 = vcmp.eq.s32.totalorder %v1087_v8, 2  ;;  %vm1088_vm10 = vcmp.lt.s32.totalorder %v1087_v8, 2 }
 0x136   : > { %v855_v22 = vclz %v1344_v20  ;;  %v746_v23 = vshll.u32 %v745_v21, 30  ;;  %v769_v3 = vsub.s32 4, %v745_v21  ;;  %vm886_vm4 = vcmp.eq.s32.totalorder %v881_v7, 2 }
 0x137   : > { %vm883_vm6 = vcmp.eq.s32.totalorder %v881_v7, 0  ;;  %vm882_vm8 = vcmp.lt.s32.totalorder %v881_v7, 2 }
 0x138   : > { %v1345_v24 = vadd.s32 4294967294, %v855_v22  ;;  %v747_v25 = vsub.s32 %v743_v17, %v746_v23  ;;  %v770_v6 = vsel %vm685_vm2, %v769_v3, %v745_v21 }
 0x139   : > { %v772_v11 = vsel %vm684_vm3, 0, %v770_v6 }
 0x13a   : > { %vm1346_vm13 = vcmp.lt.s32.totalorder %v1345_v24, 0  ;;  %v749_v27 = vsub.s32 0, %v747_v25  ;;  %v776_v58 = vadd.s32 3, %v772_v11 }
 0x13b   : > { %v858_v26 = vsel %vm1346_vm13, 0, %v1345_v24 }
 0x13c   : > { %v859_v29 = vsub.s32 32, %v858_v26  ;;  %v863_v30 = vsub.s32 4294967266, %v858_v26  ;;  %v1340_v31 = vmin.u32 %v749_v27, %v747_v25  ;;  %v860_v32 = vshll.u32 %v851_v15, %v858_v26 }
 0x13d   : > { %v777_v21 = vand.u32 3, %v776_v58 }
 0x13e   : > { %v861_v34 = vshrl.u32 %v843_v28, %v859_v29  ;;  %v864_v39 = vadd.s32 127, %v863_v30  ;;  %v751_v40 = vclz %v1340_v31 }
 0x13f   : > { %vm782_vm11 = vcmp.eq.s32.totalorder %v777_v21, 2  ;;  %vm779_vm12 = vcmp.eq.s32.totalorder %v777_v21, 0 }
 0x140   : > { %v862_v42 = vor.u32 %v861_v34, %v860_v32  ;;  %v865_v43 = vshll.u32 %v864_v39, 23  ;;  %v1341_v44 = vadd.s32 4294967294, %v751_v40 }
 0x142   : > { %v866_v45 = vor.u32 4788187, %v865_v43  ;;  %vm1342_vm14 = vcmp.lt.s32.totalorder %v1341_v44, 0  ;;  %v869_v47 = vcvt.s32.f32 %v862_v42 }
 0x143   : > { %v754_v48 = vsel %vm1342_vm14, 0, %v1341_v44 }
 0x144   : > { %v867_v46 = vand.u32 2147483647, %v866_v45  ;;  %v755_v50 = vsub.s32 32, %v754_v48  ;;  %v759_v51 = vsub.s32 4294967266, %v754_v48  ;;  %v756_v52 = vshll.u32 %v747_v25, %v754_v48 }
 0x146   : > { %v870_v37 = vmul.f32 %v869_v47, %v867_v46  ;;  %v757_v55 = vshrl.u32 %v739_v49, %v755_v50  ;;  %v760_v57 = vadd.s32 127, %v759_v51 }
 0x148   : > { %v871_v60 = vxor.u32 2147483648, %v870_v37  ;;  %v758_v61 = vor.u32 %v757_v55, %v756_v52  ;;  %v761_v54 = vshll.u32 %v760_v57, 23 }
 0x14a   : > { %v872_v62 = vsel %vm789_vm15, %v871_v60, %v870_v37  ;;  %v762_v63 = vor.u32 4788187, %v761_v54  ;;  %v765_v1 = vcvt.s32.f32 %v758_v61  ;;  %vm778_vm15 = vcmp.lt.s32.totalorder %v777_v21, 2 }
 0x14b   : > { %v875_v56 = vsel %vm788_vm1, %v1694_v33, %v872_v62  ;;  %v984_v33 = vand.u32 3, %v772_v11  ;;  %vm775_vm1 = vweird.f32 %v1696_v35 }
 0x14c   : > { %1527 = vcosq.f32 %v875_v56  ;;  %v763_v0 = vand.u32 2147483647, %v762_v63 }
 0x14d   : > { %1529 = vsinq.f32 %v875_v56  ;;  %vm986_vm13 = vcmp.eq.s32.totalorder %v984_v33, 0  ;;  %vm989_vm14 = vcmp.eq.s32.totalorder %v984_v33, 2 }
 0x14e   : > { %v766_v2 = vmul.f32 %v765_v1, %v763_v0 }
 0x150   : > { %v767_v5 = vxor.u32 2147483648, %v766_v2 }
 0x152   : > { %v768_v36 = vsel %vm685_vm2, %v767_v5, %v766_v2  ;;  %vm985_vm2 = vcmp.lt.s32.totalorder %v984_v33, 2 }
 0x153   : > { %v771_v9 = vsel %vm684_vm3, %v1696_v35, %v768_v36  ;;  %vm1143_vm3 = vcmask 261120  }
 0x154   : > { %1531 = vcosq.f32 %v771_v9 }
 0x155   : > { %1533 = vsinq.f32 %v771_v9 }
 0x156   : > { %v1528_v10 = vpop.eup %1527 }
 0x157   : > { %v1530_v12 = vpop.eup %1529  ;;  %v887_v13 = vxor.u32 2147483648, %v1528_v10 }
 0x158   : > { %v884_v14 = vxor.u32 2147483648, %v1530_v12 }
 0x159   : > { %v888_v41 = vsel %vm886_vm4, %v887_v13, %v1530_v12  ;;  %v1094_v17 = vsel %vm1092_vm7, %v887_v13, %v1530_v12  ;;  %vm1146_vm4 = vcmask 392192   ;;  %vm1155_vm7 = vcmask 785408  }
 0x15a   : > { %v885_v15 = vsel %vm883_vm6, %v1528_v10, %v884_v14  ;;  %v1091_v16 = vsel %vm1089_vm5, %v1528_v10, %v884_v14  ;;  %vm1149_vm5 = vcmask 523264   ;;  %vm1152_vm6 = vcmask 654336  }
 0x15b   : > { %v889_v18 = vsel %vm882_vm8, %v885_v15, %v888_v41  ;;  %v1095_v20 = vsel %vm1088_vm10, %v1091_v16, %v1094_v17  ;;  %vm1158_vm8 = vcmask 916480  }
 0x15c   : > { %v1758_v19 = vsel %vm879_vm9, nan, %v889_v18  ;;  %v1768_v24 = vsel %vm879_vm9, nan, %v1095_v20 }
 0x15d   : > { %1107 = vrot.lane.b32.xlu1 %v1758_v19, %s1605_s5  ;;  %1101 = vrot.lane.b32.xlu0 %v1758_v19, %s1606_s6  ;;  %1246 = vst [vmem:[%s1764_s7 + $0x18] sm:$0xff] %v1758_v19 }
 0x15e   : > { %v1532_v22 = vpop.eup %1531 }
 0x15f   : > { %v1534_v23 = vpop.eup %1533  ;;  %v783_v25 = vxor.u32 2147483648, %v1532_v22 }
 0x160   : > { %v780_v26 = vxor.u32 2147483648, %v1534_v23 }
 0x161   : > { %1165 = vrot.lane.b32.xlu1 %v1768_v24, %s1606_s6  ;;  %v784_v27 = vsel %vm782_vm11, %v783_v25, %v1534_v23  ;;  %v991_v30 = vsel %vm989_vm14, %v783_v25, %v1534_v23 }
 0x162   : > { %v781_v28 = vsel %vm779_vm12, %v1532_v22, %v780_v26  ;;  %v988_v29 = vsel %vm986_vm13, %v1532_v22, %v780_v26 }
 0x163   : > { %v785_v31 = vsel %vm778_vm15, %v781_v28, %v784_v27  ;;  %v992_v34 = vsel %vm985_vm2, %v988_v29, %v991_v30 }
 0x164   : > { %v1773_v32 = vsel %vm775_vm1, nan, %v785_v31  ;;  %v1781_v39 = vsel %vm775_vm1, nan, %v992_v34 }
 0x165   : > { %1171 = vrot.lane.b32.xlu1 %v1768_v24, %s1605_s5  ;;  %1099 = vrot.lane.b32.xlu0 %v1773_v32, %s1606_s6  ;;  %1243 = vst [vmem:[%s1764_s7] sm:$0xff] %v1773_v32 }
 0x169   : > { %1113 = vrot.lane.b32.xlu1 %v1758_v19, %s1607_s8  ;;  %1163 = vrot.lane.b32.xlu0 %v1781_v39, %s1606_s6 }
 0x16d   : > { %1177 = vrot.lane.b32.xlu1 %v1768_v24, %s1607_s8  ;;  %1169 = vrot.lane.b32.xlu0 %v1781_v39, %s1605_s5 }
 0x171   : > { %1119 = vrot.lane.b32.xlu1 %v1758_v19, %s1608_s14  ;;  %1111 = vrot.lane.b32.xlu0 %v1773_v32, %s1607_s8 }
 0x175   : > { %1183 = vrot.lane.b32.xlu1 %v1768_v24, %s1608_s14  ;;  %1175 = vrot.lane.b32.xlu0 %v1781_v39, %s1607_s8 }
 0x179   : > { %1125 = vrot.lane.b32.xlu1 %v1758_v19, %s1609_s16  ;;  %1117 = vrot.lane.b32.xlu0 %v1773_v32, %s1608_s14 }
 0x17d   : > { %1189 = vrot.lane.b32.xlu1 %v1768_v24, %s1609_s16  ;;  %1181 = vrot.lane.b32.xlu0 %v1781_v39, %s1608_s14 }
 0x181   : > { %1131 = vrot.lane.b32.xlu1 %v1758_v19, %s1610_s17  ;;  %1123 = vrot.lane.b32.xlu0 %v1773_v32, %s1609_s16 }
 0x185   : > { %1195 = vrot.lane.b32.xlu1 %v1768_v24, %s1610_s17  ;;  %1187 = vrot.lane.b32.xlu0 %v1781_v39, %s1609_s16 }
 0x189   : > { %1105 = vrot.lane.b32.xlu1 %v1773_v32, %s1605_s5  ;;  %1129 = vrot.lane.b32.xlu0 %v1773_v32, %s1610_s17 }
 0x18d   : > { %1137 = vrot.lane.b32.xlu1 %v1758_v19, %s1611_s21  ;;  %1193 = vrot.lane.b32.xlu0 %v1781_v39, %s1610_s17 }
 0x191   : > { %1201 = vrot.lane.b32.xlu1 %v1768_v24, %s1611_s21  ;;  %1135 = vrot.lane.b32.xlu0 %v1773_v32, %s1611_s21 }
 0x195   : > { %1199 = vrot.lane.b32.xlu0 %v1781_v39, %s1611_s21 }
 0x1cf   : > { %v1108_v35 = vpop.permute.xlu1 %1107  ;;  %v1102_v40 = vpop.permute.xlu0 %1101 }
 0x1d0   : > { %v1142_v53 = vsel %vm174_vm0, %v1102_v40, %v1108_v35 }
 0x1d3   : > { %v1166_v42 = vpop.permute.xlu1 %1165 }
 0x1d7   : > { %v1809_v43 = vpop.permute.xlu1 %1171  ;;  %v1100_v44 = vpop.permute.xlu0 %1099 }
 0x1d8   : > { %v1206_v5 = vsel %vm174_vm0, %v1166_v42, %v1809_v43 }
 0x1db   : > { %v1114_v45 = vpop.permute.xlu1 %1113  ;;  %v1164_v46 = vpop.permute.xlu0 %1163 }
 0x1dc   : > { %v1145_v63 = vsel %vm1143_vm3, %v1142_v53, %v1114_v45 }
 0x1df   : > { %v1178_v47 = vpop.permute.xlu1 %1177  ;;  %v1811_v48 = vpop.permute.xlu0 %1169 }
 0x1e0   : > { %v1208_v8 = vsel %vm1143_vm3, %v1206_v5, %v1178_v47  ;;  %v1205_v14 = vsel %vm174_vm0, %v1164_v46, %v1811_v48 }
 0x1e3   : > { %v1120_v49 = vpop.permute.xlu1 %1119  ;;  %v1112_v50 = vpop.permute.xlu0 %1111 }
 0x1e4   : > { %v1148_v1 = vsel %vm1146_vm4, %v1145_v63, %v1120_v49 }
 0x1e7   : > { %v1184_v51 = vpop.permute.xlu1 %1183  ;;  %v1176_v37 = vpop.permute.xlu0 %1175 }
 0x1e8   : > { %v1210_v11 = vsel %vm1146_vm4, %v1208_v8, %v1184_v51  ;;  %v1207_v16 = vsel %vm1143_vm3, %v1205_v14, %v1176_v37 }
 0x1eb   : > { %v1126_v38 = vpop.permute.xlu1 %1125  ;;  %v1118_v52 = vpop.permute.xlu0 %1117 }
 0x1ec   : > { %v1151_v3 = vsel %vm1149_vm5, %v1148_v1, %v1126_v38 }
 0x1ef   : > { %v1190_v55 = vpop.permute.xlu1 %1189  ;;  %v1182_v57 = vpop.permute.xlu0 %1181 }
 0x1f0   : > { %v1212_v12 = vsel %vm1149_vm5, %v1210_v11, %v1190_v55  ;;  %v1209_v20 = vsel %vm1146_vm4, %v1207_v16, %v1182_v57 }
 0x1f3   : > { %v1132_v60 = vpop.permute.xlu1 %1131  ;;  %v1124_v61 = vpop.permute.xlu0 %1123 }
 0x1f4   : > { %v1154_v36 = vsel %vm1152_vm6, %v1151_v3, %v1132_v60 }
 0x1f7   : > { %v1196_v54 = vpop.permute.xlu1 %1195  ;;  %v1188_v62 = vpop.permute.xlu0 %1187 }
 0x1f8   : > { %v1214_v41 = vsel %vm1152_vm6, %v1212_v12, %v1196_v54  ;;  %v1211_v27 = vsel %vm1149_vm5, %v1209_v20, %v1188_v62 }
 0x1fb   : > { %v1106_v56 = vpop.permute.xlu1 %1105  ;;  %v1130_v59 = vpop.permute.xlu0 %1129 }
 0x1fc   : > { %v1141_v0 = vsel %vm174_vm0, %v1100_v44, %v1106_v56 }
 0x1fd   : > { %v1144_v2 = vsel %vm1143_vm3, %v1141_v0, %v1112_v50 }
 0x1fe   : > { %v1147_v4 = vsel %vm1146_vm4, %v1144_v2, %v1118_v52 }
 0x1ff   : > { %v1138_v6 = vpop.permute.xlu1 %1137  ;;  %v1150_v7 = vsel %vm1149_vm5, %v1147_v4, %v1124_v61  ;;  %v1194_v9 = vpop.permute.xlu0 %1193 }
 0x200   : > { %v1157_v10 = vsel %vm1155_vm7, %v1154_v36, %v1138_v6  ;;  %v1153_v13 = vsel %vm1152_vm6, %v1150_v7, %v1130_v59  ;;  %v1213_v28 = vsel %vm1152_vm6, %v1211_v27, %v1194_v9 }
 0x201   : > { %v1160_v58 = vsel %vm1158_vm8, %v1157_v10, %v1758_v19 }
 0x202   : > { %v1222_v22 = vmul.f32 %v1160_v58, %v1768_v24  ;;  %v1228_v23 = vmul.f32 %v1160_v58, %v1758_v19 }
 0x203   : > { %v1202_v15 = vpop.permute.xlu1 %1201  ;;  %v1136_v17 = vpop.permute.xlu0 %1135 }
 0x204   : > { %v1216_v18 = vsel %vm1155_vm7, %v1214_v41, %v1202_v15  ;;  %v1156_v21 = vsel %vm1155_vm7, %v1153_v13, %v1136_v17 }
 0x205   : > { %v1218_v33 = vsel %vm1158_vm8, %v1216_v18, %v1768_v24  ;;  %v1159_v29 = vsel %vm1158_vm8, %v1156_v21, %v1773_v32 }
 0x206   : > { %v1220_v25 = vmul.f32 %v1218_v33, %v1758_v19  ;;  %v1226_v26 = vmul.f32 %v1218_v33, %v1768_v24  ;;  %v1221_v24 = vmul.f32 %v1159_v29, %v1781_v39  ;;  %v1227_v42 = vmul.f32 %v1159_v29, %v1773_v32 }
 0x207   : > { %v1200_v31 = vpop.permute.xlu0 %1199 }
 0x208   : > { %v1224_v30 = vadd.f32 %v1222_v22, %v1220_v25  ;;  %v1230_v34 = vsub.f32 %v1226_v26, %v1228_v23  ;;  %v1215_v35 = vsel %vm1155_vm7, %v1213_v28, %v1200_v31 }
 0x209   : > { %v1217_v19 = vsel %vm1158_vm8, %v1215_v35, %v1781_v39 }
 0x20a   : > { %v1240_v40 = vsel %vm1143_vm3, %v1224_v30, %v1809_v43  ;;  %1235 = vrot.lane.b32.xlu1 %v1230_v34, %s1605_s5  ;;  %v1219_v44 = vmul.f32 %v1217_v19, %v1773_v32  ;;  %v1225_v45 = vmul.f32 %v1217_v19, %v1781_v39 }
 0x20b   : > { %1247 = vst [vmem:[%s1764_s7 + $0x20] sm:$0xff] %v1240_v40 }
 0x20c   : > { %v1223_v46 = vadd.f32 %v1221_v24, %v1219_v44  ;;  %v1229_v47 = vsub.f32 %v1225_v45, %v1227_v42 }
 0x20e   : > { %v1239_v49 = vsel %vm1143_vm3, %v1223_v46, %v1811_v48  ;;  %1233 = vrot.lane.b32.xlu0 %v1229_v47, %s1605_s5 }
 0x20f   : > { %1244 = vst [vmem:[%s1764_s7 + $0x8] sm:$0xff] %v1239_v49 }
 0x27c   : > { %v1236_v50 = vpop.permute.xlu1 %1235  ;;  %1256 = sbr.rel (!%p1668_p5) target bundleno = 672 (0x2a0), region = 32 }
 0x27d   : > { %v1242_v51 = vsel %vm1143_vm3, %v1809_v43, %v1236_v50 }
 0x27e   : > { %1248 = vst.msk [vmem:[%s1764_s7 + $0x28] sm:$0xff] %vm1149_vm5, %v1242_v51 }
 0x280   : > { %v1234_v37 = vpop.permute.xlu0 %1233 }
 0x281   : > { %v1241_v32 = vsel %vm1143_vm3, %v1811_v48, %v1234_v37 }
 0x282   : > { %1245 = vst.msk [vmem:[%s1764_s7 + $0x10] sm:$0xff] %vm1149_vm5, %v1241_v32 }
 0x283   : > { %s1944_s23 = smov (!%p1259_p11, %s1258_s23), 2 }
 0x284   : > { %s1878_s24 = smul.u32 384, %s1944_s23 }
 0x286   : > { %s1264_s26 = ssub.s32 768, %s1878_s24 }
 0x287   : > { %1265 = vsyncadd %s1873_s22, %s1264_s26  ;;  %p1358_p12 = scmp.ne.s32.totalorder %s1878_s24, 0  ;;  %s1473_s27 = smul.u32 768, %s1651_s13 }
 0x288   : > { %s1271_s28 = sshll.u32 %s1764_s7, 4  ;;  %s1612_s3 = smov [#allocation2]   ;;  %s1890_s28 = int_to_ptr.vmem [resolvable:$true] %s1271_s28 }
 0x289   : > { %s1888_s30 = scalar_lea.hbm %s1936_s2, %s1473_s27  ;;  %s1535_s25 = scalar_lea.vmem %s1890_s28, %s1878_s24 }
 0x28a   : > { %p1536_p13 = scmp.ne.s32.totalorder %s1890_s28, %s1535_s25  ;;  %s1539_s4 = sshll.u32 %s1612_s3, 4  ;;  %s1540_s4 = int_to_ptr.vmem [resolvable:$false] %s1539_s4 }
 0x28b   : > { %s1541_s13 = scalar_lea.vmem %s1540_s4, 1536  ;;  %p1542_p2 = scmp.lt.s32.totalorder %s1890_s28, %s1540_s4 }
 0x28c   : > { %p1537_p0 = pnand %p1536_p13, %p1358_p12  ;;  %p1543_p3 = scmp.lt.s32.totalorder %s1541_s13, %s1535_s25 }
 0x28e   : > { %p1538_p1 = pneg %p1537_p0  ;;  %p1544_p4 = por %p1543_p3, %p1542_p2 }
 0x290   : > { %p1545_p5 = pnand %p1544_p4, %p1538_p1 }
 0x292   : > { %1548 = shalt.err (!%p1545_p5)
}
 0x293   : > { %s1549_s5 = scalar_lea.hbm %s1888_s30, %s1878_s24  ;;  %s1553_s8 = scalar_lea.hbm %s1936_s2, 1920 }
 0x294   : > { %p1550_p7 = scmp.ne.s32.totalorder %s1888_s30, %s1549_s5  ;;  %p1554_p10 = scmp.lt.u32.totalorder %s1888_s30, %s1936_s2 }
 0x295   : > { %p1555_p11 = scmp.lt.u32.totalorder %s1553_s8, %s1549_s5  ;;  %p1557_p0 = scmp.lt.u32.totalorder %s1549_s5, %s1888_s30 }
 0x296   : > { %p1551_p8 = pnand %p1550_p7, %p1358_p12 }
 0x297   : > { %p1556_p13 = por %p1555_p11, %p1554_p10 }
 0x298   : > { %p1552_p9 = pneg %p1551_p8 }
 0x299   : > { %p1558_p1 = por %p1557_p0, %p1556_p13 }
 0x29b   : > { %p1559_p2 = pnand %p1558_p1, %p1552_p9 }
 0x29d   : > { %1562 = shalt.err (!%p1559_p2)
}
 0x29e   : > { %s1613_s17 = smov 384   ;;  %s1614_s21 = smov 24  }
 0x29f   : > { %1277 = dma.vmem_to_hbm [thread:$0]  (%p1358_p12), %s1890_s28, %s1878_s24, %s1888_s30, %s1873_s22, %s1613_s17, %s1613_s17, %s1614_s21  }
 0x2a0 PF: > { %p1479_p3 = scmp.ge.s32.totalorder %s1597_s12, 2  ;;  %s1286_s23 = sand.u32 1, %s1585_s9  }
 0x2a1   : > { %s1287_s26 = scalar_lea.sflag [#allocation3], %s1286_s23 }
 0x2a2   : > { %p1476_p4 = pnand %p1479_p3, %p1672_p6 }
 0x2a4   : > { %1580 = dma.done.wait (!%p1476_p4), %s1287_s26, 768  }
 0x2a5   : > { %1582 = vsyncadd (!%p1476_p4), %s1287_s26, 4294966528  ;;  %p12_p5 = scmp.ge.s32.totalorder %s1655_s15, 5   ;;  %s1939_s9 = smov %s1589_s10 }
 0x2a6   : > { %s1940_s10 = smov %s1593_s11  ;;  %s1941_s11 = smov %s1666_s18 }
 0x2a7   : > { %s1942_s12 = smov %s1655_s15  ;;  %14 = sbr.rel (!%p12_p5) target bundleno = 3 (0x3), region = 63 }
 0x2ae   :  { %1292 = vsyncpa [#allocation3], 1 }
 0x2af   :  { %1294 = vsyncpa [#allocation3 + $0x1], 1 }

</bundles_post_ra>
